<compile_context>
chip_gen: v6e
topology: v6e:2x2x1
jax: 0.10.0
libtpu: 0.0.40
codegen_flags: <defaults>
</compile_context>

<pallas_src>
import functools

import jax
import jax.numpy as jnp
from jax.experimental import pallas as pl
from jax.experimental.pallas import tpu as pltpu


_SUBLANE = 8
_LANE = 128
_VOCAB_SUBCHUNK = 512                 # max one-hot lane width materialized in-kernel
_RESIDENT_TABLE_BUDGET = 40 << 20     # bytes; comfortable under v7x 64 MiB VMEM/TC


def _round_up(x, m):
    return (x + m - 1) // m * m


def make_fused_table(weight_real, weight_imag):
    """Precompute the fused [real | imag] table ONCE (outside the per-call path).

    Pads dim so 2*dim_pad is a multiple of 128 (lane-dense output) and pads vocab so
    the in-kernel / grid vocab chunking divides evenly.  Returns (table, dim_pad).
    """
    vocab, dim = weight_real.shape
    dim_pad = _round_up(dim, 64)                      # 2*dim_pad % 128 == 0
    vocab_align = _VOCAB_SUBCHUNK if vocab > _VOCAB_SUBCHUNK else _SUBLANE
    vocab_pad = _round_up(vocab, vocab_align)
    table = jnp.zeros((vocab_pad, 2 * dim_pad), jnp.float32)
    table = table.at[:vocab, :dim].set(weight_real.astype(jnp.float32))
    table = table.at[:vocab, dim_pad:dim_pad + dim].set(weight_imag.astype(jnp.float32))
    return table, dim_pad


def _gather_kernel(ids_ref, table_ref, out_ref):
    # ids_ref   : (T, 1)            int32   token ids for this token block
    # table_ref : (vblk, 2*dim_pad) f32     current vocab block of the fused table
    # out_ref   : (T, 2*dim_pad)    f32     gathered rows, resident across vocab axis
    k = pl.program_id(1)

    T = ids_ref.shape[0]
    vblk, two_dim = table_ref.shape
    vsub = min(vblk, _VOCAB_SUBCHUNK)                 # static
    n_sub = vblk // vsub                              # static; vblk % vsub == 0 by construction
    ids = ids_ref[...]                                # (T, 1)
    block_base = k * vblk                             # element offset of this vocab block

    def body(c, acc):
        start = pl.multiple_of(c * vsub, vsub)
        chunk = table_ref[pl.ds(start, vsub), :]                          # (vsub, 2*dim_pad)
        iota = jax.lax.broadcasted_iota(jnp.int32, (T, vsub), 1)
        one_hot = (iota + (block_base + start) == ids).astype(jnp.float32)  # exact 0/1
        return acc + jnp.dot(one_hot, chunk,
                             precision=jax.lax.Precision.HIGHEST,
                             preferred_element_type=jnp.float32)

    acc = jax.lax.fori_loop(0, n_sub, body,
                            jnp.zeros((T, two_dim), jnp.float32),
                            unroll=(n_sub <= 8))

    @pl.when(k == 0)
    def _():
        out_ref[...] = acc

    @pl.when(k > 0)
    def _():
        out_ref[...] += acc


def complex_embedding(ids, table, dim, dim_pad, *, block_tokens=512):
    """ids: [B, S] int; table: fused/padded [vocab_pad, 2*dim_pad] f32 from
    make_fused_table -> [B, S, dim] complex64."""
    B, S = ids.shape
    vocab_pad, two_dim = table.shape
    n_tok = B * S

    # --- token blocking: multiple of 8, >=2 blocks when possible (v7x megacore) ---
    T = _round_up(min(block_tokens, max(n_tok, 1)), _SUBLANE)
    if _round_up(n_tok, _SUBLANE) > _SUBLANE:
        T = min(T, _round_up(pl.cdiv(n_tok, 2), _SUBLANE))
    n_pad = _round_up(n_tok, T)
    n_blocks = n_pad // T

    ids_flat = ids.reshape(n_tok).astype(jnp.int32)
    ids_pad = jnp.pad(ids_flat, (0, n_pad - n_tok))   # pad with id 0 (valid row)
    ids_col = ids_pad.reshape(n_pad, 1)               # ids on the sublane axis

    # --- vocab blocking: resident (single DMA, single buffer) vs streamed ---
    table_bytes = vocab_pad * two_dim * 4
    resident = table_bytes <= _RESIDENT_TABLE_BUDGET
    if resident:
        vblk = vocab_pad
        table_spec = pl.BlockSpec((vblk, two_dim), lambda i, k: (0, 0),
                                  pipeline_mode=pl.Buffered(1))
    else:
        vblk = _VOCAB_SUBCHUNK if vocab_pad % _VOCAB_SUBCHUNK == 0 else vocab_pad
        table_spec = pl.BlockSpec((vblk, two_dim), lambda i, k: (k, 0))
    assert vocab_pad % vblk == 0
    n_vblocks = vocab_pad // vblk

    # --- explicit VMEM budget (default scoped limits are far below physical) ---
    vsub = min(vblk, _VOCAB_SUBCHUNK)
    table_buf = vblk * two_dim * 4 * (1 if resident else 2)
    out_buf = 2 * T * two_dim * 4
    ids_buf = 2 * T * _LANE * 4                       # (T,1) i32 blocks pad to 128 lanes
    work_buf = T * vsub * 4 + T * two_dim * 4         # one-hot chunk + accumulator
    vmem_need = table_buf + out_buf + ids_buf + work_buf
    vmem_limit = int(min(vmem_need + (16 << 20), 64 << 20))

    out = pl.pallas_call(
        _gather_kernel,
        grid_spec=pl.GridSpec(
            grid=(n_blocks, n_vblocks),
            in_specs=[
                pl.BlockSpec((T, 1), lambda i, k: (i, 0)),
                table_spec,
            ],
            out_specs=pl.BlockSpec((T, two_dim), lambda i, k: (i, 0)),
        ),
        out_shape=jax.ShapeDtypeStruct((n_pad, two_dim), jnp.float32),
        compiler_params=pltpu.CompilerParams(
            dimension_semantics=("parallel", "arbitrary"),
            vmem_limit_bytes=vmem_limit,
        ),
        cost_estimate=pl.CostEstimate(
            flops=2 * n_pad * vocab_pad * two_dim,
            transcendentals=0,
            bytes_accessed=(n_pad * 4
                            + table_bytes * (1 if resident else n_blocks)
                            + n_pad * two_dim * 4),
        ),
    )(ids_col, table)

    out = out[:n_tok]
    real = out[:, :dim]
    imag = out[:, dim_pad:dim_pad + dim]
    # Planar -> complex64 assembly stays in the wrapper (XLA fuses slice+complex);
    # the kernel output keeps a dense multiple-of-128 lane width.
    return jax.lax.complex(real, imag).reshape(B, S, dim)


if __name__ == "__main__":
    vocab_size = 32
    dim = 128
    scale = 0.02
    B, S = 2, 8

    key = jax.random.PRNGKey(0)
    k_real, k_imag, k_ids = jax.random.split(key, 3)

    # Deterministic parameter init: N(0, scale) like nn.init.normal_(std=scale).
    weight_real = scale * jax.random.normal(k_real, (vocab_size, dim), dtype=jnp.float32)
    weight_imag = scale * jax.random.normal(k_imag, (vocab_size, dim), dtype=jnp.float32)

    ids = jax.random.randint(k_ids, (B, S), 0, vocab_size, dtype=jnp.int32)

    # Fused table built ONCE (analogous to a module parameter), not per forward call.
    table, dim_pad = make_fused_table(weight_real, weight_imag)
    table = jax.block_until_ready(table)

    out = complex_embedding(ids, table, dim, dim_pad)
    out = jax.block_until_ready(out)

    # Reference check (plain JAX gather + complex assembly).
    ref = weight_real[ids] + 1j * weight_imag[ids]
    assert out.shape == (B, S, dim)
    assert out.dtype == jnp.complex64
    assert jnp.allclose(out, ref), "mismatch vs reference gather"

    print("KERNEL_OK")
</pallas_src>

<mosaic_0001>
module attributes {stable_mosaic.version = 11 : i64} {
  func.func @_gather_kernel(%arg0: i32, %arg1: i32, %arg2: memref<8x1xi32, #tpu.memory_space<vmem>>, %arg3: memref<32x256xf32, #tpu.memory_space<vmem>>, %arg4: memref<8x256xf32, #tpu.memory_space<vmem>>) attributes {dimension_semantics = [#tpu.dimension_semantics<parallel>, #tpu.dimension_semantics<arbitrary>], iteration_bounds = array<i64: 2, 1>, scalar_prefetch = 0 : i64, scratch_operands = 0 : i64, tpu.core_type = #tpu.core_type<tc>, window_params = [{transform_indices = @transform_0, window_bounds = array<i64: 8, 1>}, {pipeline_mode = #tpu.pipeline_mode<synchronous>, transform_indices = @transform_1, window_bounds = array<i64: 32, 256>}, {transform_indices = @transform_2, window_bounds = array<i64: 8, 256>}]} {
    %c0 = arith.constant 0 : index
    %c0_0 = arith.constant 0 : index
    %0 = vector.load %arg2[%c0, %c0_0] : memref<8x1xi32, #tpu.memory_space<vmem>>, vector<8x1xi32>
    %c32_i32 = arith.constant 32 : i32
    %1 = arith.muli %arg1, %c32_i32 : i32
    %cst = arith.constant 0.000000e+00 : f32
    %2 = vector.broadcast %cst : f32 to vector<8x256xf32>
    %c0_i32 = arith.constant 0 : i32
    %c32_i32_1 = arith.constant 32 : i32
    %3 = arith.muli %c0_i32, %c32_i32_1 : i32
    %4 = tpu.assume_multiple %3, 32 : i32
    %5 = arith.index_cast %4 : i32 to index
    %c0_2 = arith.constant 0 : index
    %6 = vector.load %arg3[%5, %c0_2] : memref<32x256xf32, #tpu.memory_space<vmem>>, vector<32x256xf32>
    %7 = tpu.iota {dimensions = array<i32: 1>} : vector<8x32xi32>
    %8 = arith.addi %1, %4 : i32
    %9 = vector.broadcast %8 : i32 to vector<8x32xi32>
    %10 = arith.addi %7, %9 : vector<8x32xi32>
    %11 = vector.broadcast %0 : vector<8x1xi32> to vector<8x32xi32>
    %12 = arith.cmpi eq, %10, %11 : vector<8x32xi32>
    %13 = arith.extui %12 : vector<8x32xi1> to vector<8x32xi32>
    %14 = arith.sitofp %13 : vector<8x32xi32> to vector<8x32xf32>
    %cst_3 = arith.constant dense<0.000000e+00> : vector<8x256xf32>
    %15 = tpu.matmul %14, %6, %cst_3 {dimension_numbers = #tpu.dot_dimension_numbers<[1], [0], [0], [1], [0, 0, 1, 1], [], []>, precision = #tpu.contract_precision<fp32>} : vector<8x32xf32>, vector<32x256xf32>, vector<8x256xf32> -> vector<8x256xf32>
    %16 = arith.addf %2, %15 : vector<8x256xf32>
    %c1_i32 = arith.constant 1 : i32
    %c0_i32_4 = arith.constant 0 : i32
    %17 = arith.cmpi eq, %arg1, %c0_i32_4 : i32
    %18 = arith.extui %17 : i1 to i32
    %c0_i32_5 = arith.constant 0 : i32
    %19 = arith.cmpi ne, %18, %c0_i32_5 : i32
    scf.if %19 {
      %c0_8 = arith.constant 0 : index
      %c0_9 = arith.constant 0 : index
      %23 = vector.load %arg4[%c0_8, %c0_9] : memref<8x256xf32, #tpu.memory_space<vmem>>, vector<8x256xf32>
      tpu.vector_store %arg4[%c0_8, %c0_9], %16 {strides = array<i32>} : memref<8x256xf32, #tpu.memory_space<vmem>>, vector<8x256xf32>,
    } else {
    }
    %c0_i32_6 = arith.constant 0 : i32
    %20 = arith.cmpi sgt, %arg1, %c0_i32_6 : i32
    %21 = arith.extui %20 : i1 to i32
    %c0_i32_7 = arith.constant 0 : i32
    %22 = arith.cmpi ne, %21, %c0_i32_7 : i32
    scf.if %22 {
      %c0_8 = arith.constant 0 : index
      %c0_9 = arith.constant 0 : index
      %23 = vector.load %arg4[%c0_8, %c0_9] : memref<8x256xf32, #tpu.memory_space<vmem>>, vector<8x256xf32>
      %24 = arith.addf %23, %16 : vector<8x256xf32>
      %c0_10 = arith.constant 0 : index
      %c0_11 = arith.constant 0 : index
      %25 = vector.load %arg4[%c0_10, %c0_11] : memref<8x256xf32, #tpu.memory_space<vmem>>, vector<8x256xf32>
      tpu.vector_store %arg4[%c0_10, %c0_11], %24 {strides = array<i32>} : memref<8x256xf32, #tpu.memory_space<vmem>>, vector<8x256xf32>,
    } else {
    }
    return
  }
  func.func @transform_0(%arg0: i32, %arg1: i32) -> (i32, i32) {
    %c0_i32 = arith.constant 0 : i32
    %c0_i32_0 = arith.constant 0 : i32
    return %arg0, %c0_i32 : i32, i32
  }
  func.func @transform_1(%arg0: i32, %arg1: i32) -> (i32, i32) {
    %c0_i32 = arith.constant 0 : i32
    %c0_i32_0 = arith.constant 0 : i32
    %c0_i32_1 = arith.constant 0 : i32
    return %c0_i32, %c0_i32_0 : i32, i32
  }
  func.func @transform_2(%arg0: i32, %arg1: i32) -> (i32, i32) {
    %c0_i32 = arith.constant 0 : i32
    %c0_i32_0 = arith.constant 0 : i32
    return %arg0, %c0_i32 : i32, i32
  }
}

</mosaic_0001>

<bundles_post_ra>
// kernel: tpu_custom_call.1
= control target key start
LH: loop header
LB: loop body
LE: loop exit
PB: predicated region body
PF: predicated region fallthrough
CT: control target
= control target key end

     0   :  { %7 = vsyncpa [#allocation3], 0  ;;  %s1317_s0 = inlined_call_operand.vmem [shape: s32[16,1], index: 0, kind: input, shape index: {}]   ;;  %s1318_s1 = inlined_call_operand.hbm [shape: f32[32,256], index: 1, kind: input, shape index: {}]   ;;  %s1319_s2 = inlined_call_operand.hbm [shape: f32[16,256], index: 2, kind: output, shape index: {}]  }
   0x1   :  { %8 = vsyncpa [#allocation4], 0 }
   0x2   :  { %10 = vsyncpa [#allocation4 + $0x1], 0  ;;  %s1066_s9 = smov 0   ;;  %s1068_s10 = smov 0  }
   0x3   :  { %s1070_s11 = smov 0   ;;  %s1072_s12 = smov 0  }
   0x4   :  { %s1074_s13 = smov 0   ;;  %s1076_s14 = smov 0  }
   0x5 LB: > { %s847_s15 = sadd.s32 4294967295, %s1043_s14   ;;  %s848_s16 = sadd.s32 4294967294, %s1043_s14   ;;  %s1043_s14 = sphi %s1076_s14, %s16_s14   ;;  %s1039_s13 = sphi %s1074_s13, %s1328_s13   ;;  %s1035_s12 = sphi %s1072_s12, %s1327_s12   ;;  %s1031_s11 = sphi %s1070_s11, %s1326_s11   ;;  %s1027_s10 = sphi %s1068_s10, %s1325_s10   ;;  %s1023_s9 = sphi %s1066_s9, %s1324_s9  }
   0x6   : > { %s28_s17 = sadd.s32 1, %s1039_s13  ;;  %s82_s18 = sadd.s32 1, %s1031_s11 }
   0x7   : > { %p30_p0 = scmp.ge.s32.totalorder %s28_s17, 2  ;;  %p92_p1 = scmp.ne.s32.totalorder %s1031_s11, %s1027_s10 }
   0x8   : > { %p93_p2 = scmp.eq.s32.totalorder %s847_s15, 1  ;;  %p98_p3 = scmp.ne.s32.totalorder %s1027_s10, %s1023_s9 }
   0x9   : > { %s1330_s17 = smov (%p30_p0, %s28_s17), 0  ;;  %p99_p5 = scmp.eq.s32.totalorder %s848_s16, 1 }
   0xa   : > { %p1106_p4 = por %p93_p2, %p92_p1  ;;  %s79_s20 = ssub.s32 %s1039_s13, %s1330_s17 }
   0xb   : > { %p849_p6 = scmp.ge.s32.totalorder %s1043_s14, 1  ;;  %p80_p7 = scmp.eq.s32.totalorder %s79_s20, 0 }
   0xc   : > { %p1113_p8 = por %p99_p5, %p98_p3  ;;  %p106_p9 = scmp.lt.s32.totalorder %s1043_s14, 3 }
   0xd   : > { %s1119_s22 = scalar_select %p80_p7, %s1031_s11, %s82_s18  }
   0xe   : > { %p1121_p10 = pnand %p849_p6, %p106_p9  ;;  %p1125_p11 = scmp.eq.s32.totalorder %s847_s15, 0 }
   0xf   : > { %s1045_s25 = smov [#allocation2]  }
  0x10   : > { %p872_p12 = pneg %p1121_p10  ;;  %s118_s26 = sshll.u32 %s1045_s25, 4  ;;  %s119_s26 = int_to_ptr.vmem [resolvable:$true] %s118_s26 }
  0x11   : > { %s948_s27 = scalar_lea.vmem %s119_s26, 1024  ;;  %p956_p5 = scmp.lt.s32.totalorder %s119_s26, %s119_s26 }
  0x12   : > { %p873_p13 = pnand %p1125_p11, %p872_p12  ;;  %p949_p1 = scmp.ne.s32.totalorder %s119_s26, %s948_s27 }
  0x13   : > { %p957_p6 = scmp.lt.s32.totalorder %s948_s27, %s948_s27 }
  0x14   : > { %p939_p0 = pneg %p873_p13 }
  0x15   : > { %p958_p7 = por %p957_p6, %p956_p5 }
  0x16   : > { %p951_p2 = pnand %p949_p1, %p939_p0 }
  0x18   : > { %p952_p3 = pneg %p951_p2 }
  0x1a   : > { %p959_p9 = pnand %p958_p7, %p952_p3 }
  0x1c   : > { %962 = shalt.err (!%p959_p9)
}
  0x1d   : > { %s1046_s28 = smov 256   ;;  %s1047_s29 = smov 16  }
  0x1e   : > { %875 = dma.hbm_to_vmem [thread:$0]  (!%p873_p13), %s1318_s1, 1024, %s119_s26, [#allocation3], %s1046_s28, %s1046_s28, %s1047_s29  }
  0x1f   : > { %141 = sbr.rel (%p1121_p10) target bundleno = 408 (0x198), region = 28 }
  0x24   : > { %1014 = dma.done.wait (%p1125_p11), [#allocation3], 1024  }
  0x25   : > { %1016 = vsyncadd (%p1125_p11), [#allocation3], 4294966272  ;;  %p162_p12 = scmp.lt.s32.totalorder %s1035_s12, 1  ;;  %v1048_v0 = vmov 0   ;;  %v1049_v1 = vmov 0.0   ;;  %v178_v3 = vld [vmem:[#allocation2 + $0x38] sm:$0xff]  ;;  %v179_v51 = vlaneseq }
  0x26   : > { %936 = vset.pattern.permute.xlu0 %v1048_v0  ;;  %382 = vmatprep.mubr.f32.mxu1 %v1049_v1  ;;  %v177_v4 = vld [vmem:[#allocation2 + $0x30] sm:$0xff]  ;;  %v1149_v5 = vand.u32 4294901760, %v178_v3  ;;  %v176_v7 = vld [vmem:[#allocation2 + $0x28] sm:$0xff]  ;;  %v175_v8 = vld [vmem:[#allocation2 + $0x20] sm:$0xff]  ;;  %vm190_vm0 = vcmask 261120   ;;  %s159_s15 = sand.u32 1, %s1027_s10  }
  0x27   : > { %s163_s4 = scalar_select %p162_p12, %s1035_s12, 1  ;;  %266 = vmatprep.mubr.f32.mxu0 %v1049_v1  ;;  %v1151_v6 = vand.u32 4294901760, %v177_v4  ;;  %v174_v9 = vld [vmem:[#allocation2 + $0x18] sm:$0xff]  ;;  %v1153_v10 = vand.u32 4294901760, %v176_v7  ;;  %v1155_v11 = vand.u32 4294901760, %v175_v8  ;;  %v173_v13 = vld [vmem:[#allocation2 + $0x10] sm:$0xff] }
  0x28   : > { %v1157_v12 = vand.u32 4294901760, %v174_v9  ;;  %v172_v14 = vld [vmem:[#allocation2 + $0x8] sm:$0xff]  ;;  %v171_v15 = vld [vmem:[#allocation2] sm:$0xff]  ;;  %v1160_v16 = vsub.f32 %v178_v3, %v1149_v5  ;;  %v1165_v18 = vand.u32 4294901760, %v173_v13  ;;  %219 = vmatprep.subr.mxu0 %v1149_v5  ;;  %v180_v52 = vand.u32 127, %v179_v51  ;;  %s854_s16 = sshll.u32 %s159_s15, 4 }
  0x29   : > { %s855_s5 = sshll.u32 %s163_s4, 3  ;;  %v1163_v17 = vsub.f32 %v177_v4, %v1151_v6  ;;  %v1167_v19 = vand.u32 4294901760, %v172_v14  ;;  %v1171_v20 = vsub.f32 %v176_v7, %v1153_v10  ;;  %v1174_v21 = vsub.f32 %v175_v8, %v1155_v11  ;;  %221 = vmatpush1.msra.mxu0 %v1151_v6  ;;  %s865_s18 = sshll.u32 %s1035_s12, 8 }
  0x2a   : > { %s165_s8 = scalar_lea.vmem %s1317_s0, %s855_s5  ;;  %v1177_v22 = vsub.f32 %v174_v9, %v1157_v12  ;;  %v1179_v23 = vand.u32 4294901760, %v171_v15  ;;  %v304_v24 = vand.u32 4294901760, %v1160_v16  ;;  %v1185_v26 = vsub.f32 %v173_v13, %v1165_v18  ;;  %223 = vmatprep.subr.mxu0 %v1153_v10  ;;  %s161_s20 = scalar_lea.vmem [#allocation5], %s854_s16 }
  0x2b   : > { %v166_v2 = vld [vmem:[%s165_s8] sm:$0xff]  ;;  %v310_v25 = vand.u32 4294901760, %v1163_v17  ;;  %v1188_v27 = vsub.f32 %v172_v14, %v1167_v19  ;;  %v316_v28 = vand.u32 4294901760, %v1171_v20  ;;  %v322_v29 = vand.u32 4294901760, %v1174_v21  ;;  %225 = vmatpush1.msra.mxu0 %v1155_v11  ;;  %s768_s23 = sshll.u32 %s161_s20, 4  ;;  %s766_s26 = scalar_lea.hbm %s1319_s2, %s865_s18  ;;  %s769_s23 = int_to_ptr.vmem [resolvable:$true] %s768_s23 }
  0x2c   : > { %185 = vperm.xlu0 %936, %v166_v2   ;;  %v328_v30 = vand.u32 4294901760, %v1177_v22  ;;  %v1195_v31 = vsub.f32 %v171_v15, %v1179_v23  ;;  %v305_v32 = vsub.f32 %v1160_v16, %v304_v24  ;;  %v334_v34 = vand.u32 4294901760, %v1185_v26  ;;  %227 = vmatprep.subr.mxu0 %v1157_v12  ;;  %s754_s27 = scalar_lea.sflag [#allocation4], %s159_s15  ;;  %s963_s28 = scalar_lea.vmem %s769_s23, 256 }
  0x2d   : > { %v311_v33 = vsub.f32 %v1163_v17, %v310_v25  ;;  %v340_v35 = vand.u32 4294901760, %v1188_v27  ;;  %v317_v36 = vsub.f32 %v1171_v20, %v316_v28  ;;  %v323_v37 = vsub.f32 %v1174_v21, %v322_v29  ;;  %229 = vmatpush1.msra.mxu0 %v1165_v18  ;;  %p964_p10 = scmp.ne.s32.totalorder %s769_s23, %s963_s28  ;;  %s1050_s12 = smov [#allocation5]  }
  0x2e   : > { %v329_v38 = vsub.f32 %v1177_v22, %v328_v30  ;;  %v346_v39 = vand.u32 4294901760, %v1195_v31  ;;  %v306_v40 = vand.u32 4294901760, %v305_v32  ;;  %v335_v42 = vsub.f32 %v1185_v26, %v334_v34  ;;  %231 = vmatprep.subr.mxu0 %v1167_v19  ;;  %s967_s29 = sshll.u32 %s1050_s12, 4  ;;  %s968_s29 = int_to_ptr.vmem [resolvable:$false] %s967_s29 }
  0x2f   : > { %v312_v41 = vand.u32 4294901760, %v311_v33  ;;  %v341_v43 = vsub.f32 %v1188_v27, %v340_v35  ;;  %v318_v44 = vand.u32 4294901760, %v317_v36  ;;  %v324_v45 = vand.u32 4294901760, %v323_v37  ;;  %233 = vmatpush1.msra.mxu0 %v1179_v23  ;;  %p965_p11 = pnand %p964_p10, %p1106_p4  ;;  %s969_s30 = scalar_lea.vmem %s968_s29, 512 }
  0x30   : > { %v347_v46 = vsub.f32 %v1195_v31, %v346_v39  ;;  %307 = vmatprep.subr.mxu1 %v306_v40  ;;  %v330_v47 = vand.u32 4294901760, %v329_v38  ;;  %416 = vmatprep.subr.mxu0 %v1160_v16  ;;  %v336_v48 = vand.u32 4294901760, %v335_v42  ;;  %p970_p0 = scmp.lt.s32.totalorder %s769_s23, %s968_s29  ;;  %p971_p1 = scmp.lt.s32.totalorder %s969_s30, %s963_s28 }
  0x31   : > { %313 = vmatpush1.msra.mxu1 %v312_v41  ;;  %v342_v49 = vand.u32 4294901760, %v341_v43  ;;  %p966_p13 = pneg %p965_p11 }
  0x32   : > { %319 = vmatprep.subr.mxu1 %v318_v44  ;;  %v348_v50 = vand.u32 4294901760, %v347_v46  ;;  %p972_p2 = por %p971_p1, %p970_p0 }
  0x33   : > { %325 = vmatpush1.msra.mxu1 %v324_v45 }
  0x34   : > { %331 = vmatprep.subr.mxu1 %v330_v47  ;;  %p973_p3 = pnand %p972_p2, %p966_p13 }
  0x35   : > { %337 = vmatpush1.msra.mxu1 %v336_v48 }
  0x36   : > { %343 = vmatprep.subr.mxu1 %v342_v49 }
  0x37   : > { %349 = vmatpush1.msra.mxu1 %v348_v50 }
  0x38   : > { %504 = vmatprep.subr.mxu1 %v1149_v5 }
  0xa7   : > { %v186_v53 = vpop.permute.xlu0 %185 }
  0xa8   : > { %vm187_vm1 = vcmp.eq.s32.totalorder %v180_v52, %v186_v53 }
  0xa9   : > { %v856_v54 = vsel %vm187_vm1, 1.0, %v1049_v1 }
  0xaa   : > { %v192_v55 = vsel %vm190_vm0, %v856_v54, 0  ;;  %857 = vmatmul.mubr.msk.f32.vlgmr.msra.gmra.mxu1 %vm190_vm0, %v856_v54 }
  0xab   : > { %v268_v56 = vsub.f32 %v192_v55, %v192_v55  ;;  %506 = vmatpush1.msra.mxu1 %v1151_v6  ;;  %551 = vmatprep.mubr.f32.mxu1 %v1049_v1 }
  0xac   : > { %508 = vmatprep.subr.mxu1 %v1153_v10 }
  0xad   : > { %510 = vmatpush1.msra.mxu1 %v1155_v11  ;;  %v269_v57 = vand.u32 4294901760, %v268_v56 }
  0xae   : > { %512 = vmatprep.subr.mxu1 %v1157_v12 }
  0xaf   : > { %514 = vmatpush1.msra.mxu1 %v1165_v18  ;;  %v270_v58 = vsub.f32 %v268_v56, %v269_v57 }
  0xb0   : > { %516 = vmatprep.subr.mxu1 %v1167_v19 }
  0xb1   : > { %518 = vmatpush1.msra.mxu1 %v1179_v23  ;;  %v271_v59 = vand.u32 4294901760, %v270_v58 }
  0xb2   : > { %555 = vmatmul.mubr.f32.vlgmr.msra.gmra.mxu1 %v269_v57  ;;  %682 = vmatprep.subr.mxu1 %v1149_v5 }
  0xb3   : > { %684 = vmatpush1.msra.mxu1 %v1151_v6  ;;  %272 = vmatmul.mubr.f32.vlgmr.msra.gmra.mxu0 %v271_v59 }
  0xb4   : > { %419 = vmatpush1.msra.mxu0 %v1163_v17  ;;  %686 = vmatprep.subr.mxu1 %v1153_v10 }
  0xb5   : > { %422 = vmatprep.subr.mxu0 %v1171_v20  ;;  %688 = vmatpush1.msra.mxu1 %v1155_v11 }
  0xb6   : > { %425 = vmatpush1.msra.mxu0 %v1174_v21  ;;  %690 = vmatprep.subr.mxu1 %v1157_v12 }
  0xb7   : > { %428 = vmatprep.subr.mxu0 %v1177_v22  ;;  %692 = vmatpush1.msra.mxu1 %v1165_v18 }
  0xb8   : > { %431 = vmatpush1.msra.mxu0 %v1185_v26  ;;  %694 = vmatprep.subr.mxu1 %v1167_v19 }
  0xb9   : > { %434 = vmatprep.subr.mxu0 %v1188_v27  ;;  %696 = vmatpush1.msra.mxu1 %v1179_v23 }
  0xba   : > { %729 = vmatprep.mubr.f32.mxu1 %v1049_v1  ;;  %437 = vmatpush1.msra.mxu0 %v1195_v31 }
  0xbb   : > { %470 = vmatprep.mubr.f32.mxu0 %v1049_v1  ;;  %859 = vmatmul.mubr.msk.f32.vlgmr.msra.gmra.mxu1 %vm190_vm0, %v856_v54 }
  0xbc   : > { %473 = vmatmul.mubr.f32.vlgmr.msra.gmra.mxu0 %v268_v56  ;;  %588 = vmatprep.subr.mxu0 %v304_v24 }
  0xbd   : > { %592 = vmatpush1.msra.mxu0 %v310_v25  ;;  %649 = vmatprep.mubr.f32.mxu0 %v1049_v1 }
  0xbe   : > { %596 = vmatprep.subr.mxu0 %v316_v28 }
  0xbf   : > { %600 = vmatpush1.msra.mxu0 %v322_v29 }
  0xc0   : > { %604 = vmatprep.subr.mxu0 %v328_v30 }
  0xc1   : > { %608 = vmatpush1.msra.mxu0 %v334_v34 }
  0xc2   : > { %612 = vmatprep.subr.mxu0 %v340_v35 }
  0xc3   : > { %616 = vmatpush1.msra.mxu0 %v346_v39 }
  0xc4   : > { %858 = vmatmul.mubr.msk.f32.vlgmr.msra.gmra.mxu0 %vm190_vm0, %v856_v54 }
 0x16a   : > { %v385_v61 = vpop.f32.mrf.mxu1 }
 0x16c   : > { %v387_v63 = vpop.f32.mrf.mxu1 }
 0x172   : > { %v556_v2 = vpop.f32.mrf.mxu1 }
 0x173   : > { %v273_v60 = vpop.f32.mrf.mxu0 }
 0x174   : > { %v386_v1 = vadd.f32 %v385_v61, %v273_v60  ;;  %v558_v7 = vpop.f32.mrf.mxu1 }
 0x175   : > { %v275_v62 = vpop.f32.mrf.mxu0 }
 0x176   : > { %v388_v4 = vadd.f32 %v387_v63, %v275_v62 }
 0x17b   : > { %v732_v9 = vpop.f32.mrf.mxu1 }
 0x17c   : > { %v474_v0 = vpop.f32.mrf.mxu0 }
 0x17d   : > { %v475_v5 = vadd.f32 %v474_v0, %v386_v1  ;;  %v734_v16 = vpop.f32.mrf.mxu1 }
 0x17e   : > { %v476_v3 = vpop.f32.mrf.mxu0 }
 0x17f   : > { %v477_v6 = vadd.f32 %v476_v3, %v388_v4  ;;  %v557_v8 = vadd.f32 %v556_v2, %v475_v5 }
 0x181   : > { %v559_v12 = vadd.f32 %v558_v7, %v477_v6 }
 0x184   : > { %v652_v10 = vpop.f32.mrf.mxu0 }
 0x185   : > { %v653_v11 = vadd.f32 %v652_v10, %v557_v8 }
 0x186   : > { %v654_v13 = vpop.f32.mrf.mxu0 }
 0x187   : > { %v733_v14 = vadd.f32 %v732_v9, %v653_v11  ;;  %v655_v15 = vadd.f32 %v654_v13, %v559_v12 }
 0x189   : > { %741 = vst [vmem:[%s161_s20] sm:$0xff] %v733_v14  ;;  %v735_v17 = vadd.f32 %v734_v16, %v655_v15 }
 0x18b   : > { %742 = vst [vmem:[%s161_s20 + $0x8] sm:$0xff] %v735_v17 }
 0x18c   : > { %976 = shalt.err (!%p973_p3)
}
 0x18d   : > { %s977_s3 = scalar_lea.hbm %s766_s26, 256  ;;  %s981_s6 = scalar_lea.hbm %s1319_s2, 512 }
 0x18e   : > { %p978_p5 = scmp.ne.s32.totalorder %s766_s26, %s977_s3  ;;  %p982_p9 = scmp.lt.s32.totalorder %s766_s26, %s1319_s2 }
 0x18f   : > { %p983_p12 = scmp.lt.s32.totalorder %s981_s6, %s977_s3 }
 0x190   : > { %p979_p6 = pnand %p978_p5, %p1106_p4 }
 0x191   : > { %p984_p10 = por %p983_p12, %p982_p9 }
 0x192   : > { %p980_p7 = pneg %p979_p6 }
 0x194   : > { %p985_p11 = pnand %p984_p10, %p980_p7 }
 0x196   : > { %988 = shalt.err (!%p985_p11)
}
 0x197   : > { %870 = dma.vmem_to_hbm [thread:$0]  (%p1106_p4), %s769_s23, 256, %s766_s26, %s754_s27  }
 0x198 PF: > { %p882_p13 = scmp.ge.s32.totalorder %s1043_s14, 2  ;;  %s780_s15 = sand.u32 1, %s1023_s9  }
 0x199   : > { %s781_s16 = scalar_lea.sflag [#allocation4], %s780_s15 }
 0x19a   : > { %p877_p0 = pnand %p882_p13, %p1113_p8 }
 0x19c   : > { %p878_p1 = pneg %p877_p0 }
 0x19e   : > { %1018 = dma.done.wait (%p878_p1), %s781_s16, 256  }
 0x19f   : > { %1020 = vsyncadd (%p878_p1), %s781_s16, 4294967040  ;;  %s16_s14 = sadd.s32 1, %s1043_s14   ;;  %s1324_s9 = smov %s1027_s10 }
 0x1a0   : > { %p13_p2 = scmp.ge.s32.totalorder %s16_s14, 4   ;;  %s1325_s10 = smov %s1031_s11 }
 0x1a1   : > { %s1326_s11 = smov %s1119_s22  ;;  %s1327_s12 = smov %s1039_s13 }
 0x1a2   : > { %s1328_s13 = smov %s1330_s17  ;;  %15 = sbr.rel (!%p13_p2) target bundleno = 5 (0x5), region = 77 }
 0x1a7   :  { %786 = vsyncpa [#allocation3], 1 }
 0x1a8   :  { %788 = vsyncpa [#allocation3 + $0x1], 1 }
 0x1a9   :  { %789 = vsyncpa [#allocation4], 1 }
 0x1aa   :  { %791 = vsyncpa [#allocation4 + $0x1], 1 }

</bundles_post_ra>
